<compile_context>
chip_gen: v5e
topology: v5e:2x2
jax: 0.10.0
libtpu: 0.0.40
codegen_flags: <defaults>
</compile_context>

<pallas_src>
import functools

import jax
import jax.numpy as jnp
import numpy as np
from jax.experimental import pallas as pl
from jax.experimental.pallas import tpu as pltpu

_MAX_TILE = 512  # (T,T) f32 pair-tile = 1 MiB; a few live temps stay far under VMEM limits


def _combine_loss_kernel(pr_col_ref, tr_col_ref, pr_row_ref, tr_row_ref,
                         p_ref, t_ref, o_ref, rl_acc, mse_acc,
                         *, inv_n, inv_n2, alpha, lambda_const, pad_pad_sum):
    """One (T, T) tile of the pairwise rank hinge + running scalar accumulators."""
    i = pl.program_id(0)
    j = pl.program_id(1)
    last_i = pl.num_programs(0) - 1
    last_j = pl.num_programs(1) - 1

    @pl.when(jnp.logical_and(i == 0, j == 0))
    def _init():
        rl_acc[...] = jnp.zeros_like(rl_acc)
        mse_acc[...] = jnp.zeros_like(mse_acc)

    lam = jnp.float32(lambda_const)

    # Pairwise rank differences for this tile: (T,1) - (1,T) -> (T,T) broadcast (VPU).
    rd = pr_col_ref[...] - pr_row_ref[...]
    trd = tr_col_ref[...] - tr_row_ref[...]
    # Fused hinge: max(0, lambda - rd*trd)^2.  Padding carries sentinel ranks so any
    # pair containing exactly one pad element is exactly 0 here (no mask needed).
    h = jnp.maximum(jnp.float32(0.0), lam - rd * trd)
    rl_acc[...] += jnp.sum(h * h, keepdims=True)

    # MSE partial sums: each column block is visited exactly once (on the i == 0 row).
    @pl.when(i == 0)
    def _mse():
        d = p_ref[...] - t_ref[...]
        mse_acc[...] += jnp.sum(d * d, keepdims=True)

    @pl.when(jnp.logical_and(i == last_i, j == last_j))
    def _finalize():
        rl_sum = rl_acc[...] - jnp.float32(pad_pad_sum)       # drop pad-vs-pad pairs
        rl_mean = rl_sum * jnp.float32(inv_n2)                # mean over the n*n valid pairs
        mse = mse_acc[...] * jnp.float32(inv_n)
        total = mse + jnp.float32(alpha) * (rl_mean - lam * lam)
        o_ref[...] = total.astype(o_ref.dtype)


def advanced_combine_loss(preds, targets, *, alpha=1e-05 * 1e-07, lambda_const=100.0):
    """preds, targets: (N,) arrays. Returns the scalar combined loss."""
    n = preds.shape[0]
    preds = preds.astype(jnp.float32)
    targets = targets.astype(jnp.float32)

    # Ranks via one small O(N log N) XLA sort in the wrapper (drops all O(N^2) compare
    # matrices from the kernel and matches argsort∘argsort tie-breaking exactly).
    p_rank = jnp.argsort(jnp.argsort(-preds)).astype(jnp.float32)
    t_rank = jnp.argsort(jnp.argsort(-targets)).astype(jnp.float32)

    # Lane-dense padding + pair-tile sizing: whole problem in one tile when small,
    # (512, 512) pair tiles when large.
    n_lane = max(128, ((n + 127) // 128) * 128)
    tile = n_lane if n_lane <= _MAX_TILE else _MAX_TILE
    n_pad = ((n_lane + tile - 1) // tile) * tile
    pad = n_pad - n
    grid_dim = n_pad // tile

    # Sentinel rank for pad slots: any valid-vs-pad pair has |rd| >= 1 + lambda and
    # |trd| >= 1 + lambda with matching signs, so its hinge is exactly 0; only pad-vs-pad
    # pairs contribute (each exactly max(0, lambda)^2), subtracted as a constant below.
    lam_pos = float(max(lambda_const, 0.0))
    sentinel = float(n) + lam_pos
    pr = jnp.pad(p_rank, (0, pad), constant_values=sentinel)
    tr = jnp.pad(t_rank, (0, pad), constant_values=sentinel)
    p_pad = jnp.pad(preds, (0, pad))        # zero-pad both -> (p - t) == 0 on the tail
    t_pad = jnp.pad(targets, (0, pad))

    pr_row = pr.reshape(1, n_pad)
    tr_row = tr.reshape(1, n_pad)
    pr_col = pr.reshape(n_pad, 1)
    tr_col = tr.reshape(n_pad, 1)
    p_row = p_pad.reshape(1, n_pad)
    t_row = t_pad.reshape(1, n_pad)

    pad_pad_sum = float(pad) * float(pad) * lam_pos * lam_pos

    kernel = functools.partial(
        _combine_loss_kernel,
        inv_n=1.0 / n,
        inv_n2=1.0 / (n * n),
        alpha=float(alpha),
        lambda_const=float(lambda_const),
        pad_pad_sum=pad_pad_sum,
    )

    out = pl.pallas_call(
        kernel,
        out_shape=jax.ShapeDtypeStruct((1, 1), jnp.float32),
        grid_spec=pltpu.PrefetchScalarGridSpec(
            num_scalar_prefetch=0,
            grid=(grid_dim, grid_dim),
            in_specs=[
                pl.BlockSpec((tile, 1), lambda i, j: (i, 0)),   # preds rank, i-block (sublanes)
                pl.BlockSpec((tile, 1), lambda i, j: (i, 0)),   # targets rank, i-block
                pl.BlockSpec((1, tile), lambda i, j: (0, j)),   # preds rank, j-block (lanes)
                pl.BlockSpec((1, tile), lambda i, j: (0, j)),   # targets rank, j-block
                pl.BlockSpec((1, tile), lambda i, j: (0, j)),   # preds values (MSE, i == 0)
                pl.BlockSpec((1, tile), lambda i, j: (0, j)),   # target values
            ],
            out_specs=pl.BlockSpec((1, 1), lambda i, j: (0, 0)),
            scratch_shapes=[pltpu.VMEM((1, 1), jnp.float32),    # rank-loss running sum
                            pltpu.VMEM((1, 1), jnp.float32)],   # squared-error running sum
        ),
        compiler_params=pltpu.CompilerParams(
            dimension_semantics=("arbitrary", "arbitrary"),
            vmem_limit_bytes=32 * 1024 * 1024,
        ),
    )(pr_col, tr_col, pr_row, tr_row, p_row, t_row)
    return out[0, 0]


def advanced_combine_loss_reference(preds, targets, *, alpha=1e-05 * 1e-07,
                                    lambda_const=100.0):
    """Pure-JAX replica of the PyTorch forward (argsort∘argsort ranks)."""
    preds = preds.astype(jnp.float32)
    targets = targets.astype(jnp.float32)
    mse = jnp.mean((preds - targets) ** 2)
    preds_rank = jnp.argsort(jnp.argsort(-preds)).astype(jnp.float32)
    targets_rank = jnp.argsort(jnp.argsort(-targets)).astype(jnp.float32)
    rd = preds_rank[:, None] - preds_rank[None, :]
    trd = targets_rank[:, None] - targets_rank[None, :]
    rank_loss = jnp.maximum(0.0, -rd * trd + lambda_const) ** 2
    return mse + alpha * (jnp.mean(rank_loss) - lambda_const ** 2)


if __name__ == "__main__":
    n = 100  # non-multiple of 128 to exercise the sentinel-rank padding path

    key = jax.random.PRNGKey(0)
    kp, kt = jax.random.split(key)
    preds = jax.random.normal(kp, (n,), dtype=jnp.float32)
    targets = jax.random.normal(kt, (n,), dtype=jnp.float32)

    out = advanced_combine_loss(preds, targets)
    out = jax.block_until_ready(out)

    ref = jax.block_until_ready(advanced_combine_loss_reference(preds, targets))
    np.testing.assert_allclose(np.asarray(out), np.asarray(ref), rtol=1e-5, atol=1e-6)

    print("KERNEL_OK")
</pallas_src>

<mosaic_0001>
module attributes {stable_mosaic.version = 11 : i64} {
  func.func @_combine_loss_kernel(%arg0: i32, %arg1: i32, %arg2: memref<128x1xf32, #tpu.memory_space<vmem>>, %arg3: memref<128x1xf32, #tpu.memory_space<vmem>>, %arg4: memref<1x128xf32, #tpu.memory_space<vmem>>, %arg5: memref<1x128xf32, #tpu.memory_space<vmem>>, %arg6: memref<1x128xf32, #tpu.memory_space<vmem>>, %arg7: memref<1x128xf32, #tpu.memory_space<vmem>>, %arg8: memref<1x1xf32, #tpu.memory_space<vmem>>, %arg9: memref<1x1xf32, #tpu.memory_space<vmem>>, %arg10: memref<1x1xf32, #tpu.memory_space<vmem>>) attributes {dimension_semantics = [#tpu.dimension_semantics<arbitrary>, #tpu.dimension_semantics<arbitrary>], iteration_bounds = array<i64: 1, 1>, scalar_prefetch = 0 : i64, scratch_operands = 2 : i64, tpu.core_type = #tpu.core_type<tc>, window_params = [{transform_indices = @transform_0, window_bounds = array<i64: 128, 1>}, {transform_indices = @transform_1, window_bounds = array<i64: 128, 1>}, {transform_indices = @transform_2, window_bounds = array<i64: 1, 128>}, {transform_indices = @transform_3, window_bounds = array<i64: 1, 128>}, {transform_indices = @transform_4, window_bounds = array<i64: 1, 128>}, {transform_indices = @transform_5, window_bounds = array<i64: 1, 128>}, {pipeline_mode = #tpu.pipeline_mode<synchronous>, transform_indices = @transform_6, window_bounds = array<i64: 1, 1>}]} {
    %c0_i32 = arith.constant 0 : i32
    %0 = arith.cmpi eq, %arg0, %c0_i32 : i32
    %c0_i32_0 = arith.constant 0 : i32
    %1 = arith.cmpi eq, %arg1, %c0_i32_0 : i32
    %2 = arith.andi %0, %1 : i1
    %3 = arith.extui %2 : i1 to i32
    %c0_i32_1 = arith.constant 0 : i32
    %4 = arith.cmpi ne, %3, %c0_i32_1 : i32
    scf.if %4 {
      %cst_21 = arith.constant 0.000000e+00 : f32
      %37 = vector.broadcast %cst_21 : f32 to vector<1x1xf32>
      %c0_22 = arith.constant 0 : index
      %c0_23 = arith.constant 0 : index
      %38 = vector.load %arg9[%c0_22, %c0_23] : memref<1x1xf32, #tpu.memory_space<vmem>>, vector<1x1xf32>
      tpu.vector_store %arg9[%c0_22, %c0_23], %37 {strides = array<i32>} : memref<1x1xf32, #tpu.memory_space<vmem>>, vector<1x1xf32>,
      %cst_24 = arith.constant 0.000000e+00 : f32
      %39 = vector.broadcast %cst_24 : f32 to vector<1x1xf32>
      %c0_25 = arith.constant 0 : index
      %c0_26 = arith.constant 0 : index
      %40 = vector.load %arg10[%c0_25, %c0_26] : memref<1x1xf32, #tpu.memory_space<vmem>>, vector<1x1xf32>
      tpu.vector_store %arg10[%c0_25, %c0_26], %39 {strides = array<i32>} : memref<1x1xf32, #tpu.memory_space<vmem>>, vector<1x1xf32>,
    } else {
    }
    %c0 = arith.constant 0 : index
    %c0_2 = arith.constant 0 : index
    %5 = vector.load %arg2[%c0, %c0_2] : memref<128x1xf32, #tpu.memory_space<vmem>>, vector<128x1xf32>
    %c0_3 = arith.constant 0 : index
    %c0_4 = arith.constant 0 : index
    %6 = vector.load %arg4[%c0_3, %c0_4] : memref<1x128xf32, #tpu.memory_space<vmem>>, vector<1x128xf32>
    %7 = vector.broadcast %5 : vector<128x1xf32> to vector<128x128xf32>
    %8 = vector.broadcast %6 : vector<1x128xf32> to vector<128x128xf32>
    %9 = arith.subf %7, %8 : vector<128x128xf32>
    %c0_5 = arith.constant 0 : index
    %c0_6 = arith.constant 0 : index
    %10 = vector.load %arg3[%c0_5, %c0_6] : memref<128x1xf32, #tpu.memory_space<vmem>>, vector<128x1xf32>
    %c0_7 = arith.constant 0 : index
    %c0_8 = arith.constant 0 : index
    %11 = vector.load %arg5[%c0_7, %c0_8] : memref<1x128xf32, #tpu.memory_space<vmem>>, vector<1x128xf32>
    %12 = vector.broadcast %10 : vector<128x1xf32> to vector<128x128xf32>
    %13 = vector.broadcast %11 : vector<1x128xf32> to vector<128x128xf32>
    %14 = arith.subf %12, %13 : vector<128x128xf32>
    %15 = arith.mulf %9, %14 : vector<128x128xf32>
    %cst = arith.constant 1.000000e+02 : f32
    %16 = vector.broadcast %cst : f32 to vector<128x128xf32>
    %17 = arith.subf %16, %15 : vector<128x128xf32>
    %cst_9 = arith.constant 0.000000e+00 : f32
    %18 = vector.broadcast %cst_9 : f32 to vector<128x128xf32>
    %19 = arith.maximumf %18, %17 : vector<128x128xf32>
    %c0_10 = arith.constant 0 : index
    %c0_11 = arith.constant 0 : index
    %20 = vector.load %arg9[%c0_10, %c0_11] : memref<1x1xf32, #tpu.memory_space<vmem>>, vector<1x1xf32>
    %21 = arith.mulf %19, %19 : vector<128x128xf32>
    %22 = vector.shape_cast %21 : vector<128x128xf32> to vector<1x128x128xf32>
    %cst_12 = arith.constant dense<0.000000e+00> : vector<1xf32>
    %23 = vector.multi_reduction <add>, %22, %cst_12 [1, 2] : vector<1x128x128xf32> to vector<1xf32>
    %24 = vector.shape_cast %23 : vector<1xf32> to vector<1x1x1xf32>
    %25 = vector.extract %24[0, 0, 0] : f32 from vector<1x1x1xf32>
    %26 = vector.broadcast %25 : f32 to vector<1x1xf32>
    %27 = arith.addf %20, %26 : vector<1x1xf32>
    %c0_13 = arith.constant 0 : index
    %c0_14 = arith.constant 0 : index
    %28 = vector.load %arg9[%c0_13, %c0_14] : memref<1x1xf32, #tpu.memory_space<vmem>>, vector<1x1xf32>
    tpu.vector_store %arg9[%c0_13, %c0_14], %27 {strides = array<i32>} : memref<1x1xf32, #tpu.memory_space<vmem>>, vector<1x1xf32>,
    %c0_i32_15 = arith.constant 0 : i32
    %29 = arith.cmpi eq, %arg0, %c0_i32_15 : i32
    %30 = arith.extui %29 : i1 to i32
    %c0_i32_16 = arith.constant 0 : i32
    %31 = arith.cmpi ne, %30, %c0_i32_16 : i32
    scf.if %31 {
      %c0_21 = arith.constant 0 : index
      %c0_22 = arith.constant 0 : index
      %37 = vector.load %arg6[%c0_21, %c0_22] : memref<1x128xf32, #tpu.memory_space<vmem>>, vector<1x128xf32>
      %c0_23 = arith.constant 0 : index
      %c0_24 = arith.constant 0 : index
      %38 = vector.load %arg7[%c0_23, %c0_24] : memref<1x128xf32, #tpu.memory_space<vmem>>, vector<1x128xf32>
      %39 = arith.subf %37, %38 : vector<1x128xf32>
      %c0_25 = arith.constant 0 : index
      %c0_26 = arith.constant 0 : index
      %40 = vector.load %arg10[%c0_25, %c0_26] : memref<1x1xf32, #tpu.memory_space<vmem>>, vector<1x1xf32>
      %41 = arith.mulf %39, %39 : vector<1x128xf32>
      %42 = vector.shape_cast %41 : vector<1x128xf32> to vector<1x1x128xf32>
      %cst_27 = arith.constant dense<0.000000e+00> : vector<1xf32>
      %43 = vector.multi_reduction <add>, %42, %cst_27 [1, 2] : vector<1x1x128xf32> to vector<1xf32>
      %44 = vector.shape_cast %43 : vector<1xf32> to vector<1x1x1xf32>
      %45 = vector.extract %44[0, 0, 0] : f32 from vector<1x1x1xf32>
      %46 = vector.broadcast %45 : f32 to vector<1x1xf32>
      %47 = arith.addf %40, %46 : vector<1x1xf32>
      %c0_28 = arith.constant 0 : index
      %c0_29 = arith.constant 0 : index
      %48 = vector.load %arg10[%c0_28, %c0_29] : memref<1x1xf32, #tpu.memory_space<vmem>>, vector<1x1xf32>
      tpu.vector_store %arg10[%c0_28, %c0_29], %47 {strides = array<i32>} : memref<1x1xf32, #tpu.memory_space<vmem>>, vector<1x1xf32>,
    } else {
    }
    %c0_i32_17 = arith.constant 0 : i32
    %32 = arith.cmpi eq, %arg0, %c0_i32_17 : i32
    %c0_i32_18 = arith.constant 0 : i32
    %33 = arith.cmpi eq, %arg1, %c0_i32_18 : i32
    %34 = arith.andi %32, %33 : i1
    %35 = arith.extui %34 : i1 to i32
    %cst_19 = arith.constant 1.000000e+02 : f32
    %c0_i32_20 = arith.constant 0 : i32
    %36 = arith.cmpi ne, %35, %c0_i32_20 : i32
    scf.if %36 {
      %c0_21 = arith.constant 0 : index
      %c0_22 = arith.constant 0 : index
      %37 = vector.load %arg9[%c0_21, %c0_22] : memref<1x1xf32, #tpu.memory_space<vmem>>, vector<1x1xf32>
      %cst_23 = arith.constant 7.840000e+06 : f32
      %38 = vector.broadcast %cst_23 : f32 to vector<1x1xf32>
      %39 = arith.subf %37, %38 : vector<1x1xf32>
      %cst_24 = arith.constant 9.99999974E-5 : f32
      %40 = vector.broadcast %cst_24 : f32 to vector<1x1xf32>
      %41 = arith.mulf %39, %40 : vector<1x1xf32>
      %c0_25 = arith.constant 0 : index
      %c0_26 = arith.constant 0 : index
      %42 = vector.load %arg10[%c0_25, %c0_26] : memref<1x1xf32, #tpu.memory_space<vmem>>, vector<1x1xf32>
      %cst_27 = arith.constant 0.00999999977 : f32
      %43 = vector.broadcast %cst_27 : f32 to vector<1x1xf32>
      %44 = arith.mulf %42, %43 : vector<1x1xf32>
      %45 = arith.mulf %cst_19, %cst_19 : f32
      %46 = vector.broadcast %45 : f32 to vector<1x1xf32>
      %47 = arith.subf %41, %46 : vector<1x1xf32>
      %cst_28 = arith.constant 9.99999996E-13 : f32
      %48 = vector.broadcast %cst_28 : f32 to vector<1x1xf32>
      %49 = arith.mulf %48, %47 : vector<1x1xf32>
      %50 = arith.addf %44, %49 : vector<1x1xf32>
      %c0_29 = arith.constant 0 : index
      %c0_30 = arith.constant 0 : index
      %51 = vector.load %arg8[%c0_29, %c0_30] : memref<1x1xf32, #tpu.memory_space<vmem>>, vector<1x1xf32>
      tpu.vector_store %arg8[%c0_29, %c0_30], %50 {strides = array<i32>} : memref<1x1xf32, #tpu.memory_space<vmem>>, vector<1x1xf32>,
    } else {
    }
    return
  }
  func.func @transform_0(%arg0: i32, %arg1: i32) -> (i32, i32) {
    %c0_i32 = arith.constant 0 : i32
    %c0_i32_0 = arith.constant 0 : i32
    return %arg0, %c0_i32 : i32, i32
  }
  func.func @transform_1(%arg0: i32, %arg1: i32) -> (i32, i32) {
    %c0_i32 = arith.constant 0 : i32
    %c0_i32_0 = arith.constant 0 : i32
    return %arg0, %c0_i32 : i32, i32
  }
  func.func @transform_2(%arg0: i32, %arg1: i32) -> (i32, i32) {
    %c0_i32 = arith.constant 0 : i32
    %c0_i32_0 = arith.constant 0 : i32
    return %c0_i32, %arg1 : i32, i32
  }
  func.func @transform_3(%arg0: i32, %arg1: i32) -> (i32, i32) {
    %c0_i32 = arith.constant 0 : i32
    %c0_i32_0 = arith.constant 0 : i32
    return %c0_i32, %arg1 : i32, i32
  }
  func.func @transform_4(%arg0: i32, %arg1: i32) -> (i32, i32) {
    %c0_i32 = arith.constant 0 : i32
    %c0_i32_0 = arith.constant 0 : i32
    return %c0_i32, %arg1 : i32, i32
  }
  func.func @transform_5(%arg0: i32, %arg1: i32) -> (i32, i32) {
    %c0_i32 = arith.constant 0 : i32
    %c0_i32_0 = arith.constant 0 : i32
    return %c0_i32, %arg1 : i32, i32
  }
  func.func @transform_6(%arg0: i32, %arg1: i32) -> (i32, i32) {
    %c0_i32 = arith.constant 0 : i32
    %c0_i32_0 = arith.constant 0 : i32
    %c0_i32_1 = arith.constant 0 : i32
    return %c0_i32, %c0_i32_0 : i32, i32
  }
}

</mosaic_0001>

<bundles_post_ra>
// kernel: tpu_custom_call.1
= control target key start
LH: loop header
LB: loop body
LE: loop exit
PB: predicated region body
PF: predicated region fallthrough
CT: control target
= control target key end

     0   :  { %v447_v3 = vmov 0   ;;  %s640_s0 = inlined_call_operand.vmem [shape: f32[128,1], index: 0, kind: input, shape index: {}]   ;;  %s641_s1 = inlined_call_operand.vmem [shape: f32[128,1], index: 1, kind: input, shape index: {}]   ;;  %s642_s2 = inlined_call_operand.vmem [shape: f32[1,128], index: 2, kind: input, shape index: {}]   ;;  %s643_s3 = inlined_call_operand.vmem [shape: f32[1,128], index: 3, kind: input, shape index: {}]   ;;  %s644_s4 = inlined_call_operand.vmem [shape: f32[1,128], index: 4, kind: input, shape index: {}]   ;;  %s645_s5 = inlined_call_operand.vmem [shape: f32[1,128], index: 5, kind: input, shape index: {}]   ;;  %s646_s6 = inlined_call_operand.hbm [shape: f32[1,1], index: 6, kind: output, shape index: {}]  }
   0x1   :  { %v149_v0 = vld [vmem:[%s641_s1] sm:$0xff]  ;;  %v35_v1 = vld [vmem:[%s640_s0 + $0x10] sm:$0xff]  ;;  %418 = vset.pattern.permute.xlu2 %v447_v3  ;;  %417 = vset.pattern.permute.xlu1 %v447_v3 }
   0x2   :  { %v33_v2 = vld [vmem:[%s640_s0] sm:$0xff]  ;;  %416 = vset.pattern.permute.xlu0 %v447_v3  ;;  %168 = vperm.xlu1 %417, %v149_v0  }
   0x3   :  { %62 = vperm.xlu2 %418, %v35_v1   ;;  %52 = vperm.xlu0 %416, %v33_v2  }
   0x4   :  { %11 = vsyncpa [#allocation5], 0  ;;  %v150_v4 = vld [vmem:[%s641_s1 + $0x8] sm:$0xff]  ;;  %v151_v5 = vld [vmem:[%s641_s1 + $0x10] sm:$0xff]  ;;  %vm366_vm0 = vcmask 1040384   ;;  %vm30_vm1 = vcmask 0  }
   0x5   :  { %v34_v6 = vld [vmem:[%s640_s0 + $0x8] sm:$0xff]  ;;  %v152_v7 = vld [vmem:[%s641_s1 + $0x18] sm:$0xff]  ;;  %v37_v8 = vld [vmem:[%s640_s0 + $0x20] sm:$0xff]  ;;  %s449_s17 = smov [#allocation4]   ;;  %s398_s21 = sshll.u32 %s646_s6, 4  ;;  %s399_s21 = int_to_ptr.hbm [resolvable:$true] %s398_s21 }
   0x6   :  { %v36_v9 = vld [vmem:[%s640_s0 + $0x18] sm:$0xff]  ;;  %v38_v10 = vld [vmem:[%s640_s0 + $0x28] sm:$0xff]  ;;  %v153_v12 = vld [vmem:[%s641_s1 + $0x20] sm:$0xff]  ;;  %s396_s18 = sshll.u32 %s449_s17, 4  ;;  %s397_s18 = int_to_ptr.vmem [resolvable:$true] %s396_s18 }
   0x7   :  { %v154_v11 = vld [vmem:[%s641_s1 + $0x28] sm:$0xff]  ;;  %v155_v13 = vld [vmem:[%s641_s1 + $0x30] sm:$0xff]  ;;  %v40_v14 = vld [vmem:[%s640_s0 + $0x38] sm:$0xff] }
   0x8   :  { %v39_v15 = vld [vmem:[%s640_s0 + $0x30] sm:$0xff]  ;;  %v41_v16 = vld [vmem:[%s640_s0 + $0x40] sm:$0xff]  ;;  %v156_v18 = vld [vmem:[%s641_s1 + $0x38] sm:$0xff] }
   0x9   :  { %v157_v17 = vld [vmem:[%s641_s1 + $0x40] sm:$0xff]  ;;  %v158_v19 = vld [vmem:[%s641_s1 + $0x48] sm:$0xff]  ;;  %v43_v20 = vld [vmem:[%s640_s0 + $0x50] sm:$0xff] }
   0xa   :  { %173 = vperm.xlu1 %417, %v150_v4   ;;  %v42_v21 = vld [vmem:[%s640_s0 + $0x48] sm:$0xff]  ;;  %v44_v22 = vld [vmem:[%s640_s0 + $0x58] sm:$0xff]  ;;  %v159_v24 = vld [vmem:[%s641_s1 + $0x50] sm:$0xff] }
   0xb   :  { %178 = vperm.xlu2 %418, %v151_v5   ;;  %57 = vperm.xlu0 %416, %v34_v6   ;;  %v160_v23 = vld [vmem:[%s641_s1 + $0x58] sm:$0xff]  ;;  %v161_v25 = vld [vmem:[%s641_s1 + $0x60] sm:$0xff]  ;;  %v46_v26 = vld [vmem:[%s640_s0 + $0x68] sm:$0xff] }
   0xc   :  { %v45_v27 = vld [vmem:[%s640_s0 + $0x60] sm:$0xff]  ;;  %v47_v28 = vld [vmem:[%s640_s0 + $0x70] sm:$0xff]  ;;  %v162_v30 = vld [vmem:[%s641_s1 + $0x68] sm:$0xff] }
   0xd   :  { %v163_v29 = vld [vmem:[%s641_s1 + $0x70] sm:$0xff]  ;;  %v164_v31 = vld [vmem:[%s641_s1 + $0x78] sm:$0xff]  ;;  %v584_v46 = vld [vmem:[%s642_s2] ss:$0 sm:$0xff] }
   0xe   :  { %v48_v32 = vld [vmem:[%s640_s0 + $0x78] sm:$0xff]  ;;  %v589_v47 = vld [vmem:[%s643_s3] ss:$0 sm:$0xff] }
  0x12   :  { %183 = vperm.xlu1 %417, %v152_v7  }
  0x13   :  { %72 = vperm.xlu2 %418, %v37_v8   ;;  %67 = vperm.xlu0 %416, %v36_v9  }
  0x1a   :  { %77 = vperm.xlu1 %417, %v38_v10  }
  0x1b   :  { %193 = vperm.xlu2 %418, %v154_v11   ;;  %188 = vperm.xlu0 %416, %v153_v12  }
  0x22   :  { %198 = vperm.xlu1 %417, %v155_v13  }
  0x23   :  { %87 = vperm.xlu2 %418, %v40_v14   ;;  %82 = vperm.xlu0 %416, %v39_v15  }
  0x2a   :  { %92 = vperm.xlu1 %417, %v41_v16  }
  0x2b   :  { %208 = vperm.xlu2 %418, %v157_v17   ;;  %203 = vperm.xlu0 %416, %v156_v18  }
  0x32   :  { %213 = vperm.xlu1 %417, %v158_v19  }
  0x33   :  { %102 = vperm.xlu2 %418, %v43_v20   ;;  %97 = vperm.xlu0 %416, %v42_v21  }
  0x3a   :  { %107 = vperm.xlu1 %417, %v44_v22  }
  0x3b   :  { %223 = vperm.xlu2 %418, %v160_v23   ;;  %218 = vperm.xlu0 %416, %v159_v24  }
  0x42   :  { %228 = vperm.xlu1 %417, %v161_v25  }
  0x43   :  { %117 = vperm.xlu2 %418, %v46_v26   ;;  %112 = vperm.xlu0 %416, %v45_v27  }
  0x4a   :  { %122 = vperm.xlu1 %417, %v47_v28  }
  0x4b   :  { %238 = vperm.xlu2 %418, %v163_v29   ;;  %233 = vperm.xlu0 %416, %v162_v30  }
  0x52   :  { %243 = vperm.xlu1 %417, %v164_v31  }
  0x53   :  { %127 = vperm.xlu0 %416, %v48_v32  }
  0x5d   :  { %v63_v33 = vpop.permute.xlu2 %62 }
  0x5e   :  { %v135_v56 = vsub.f32 %v63_v33, %v584_v46 }
  0x65   :  { %v179_v34 = vpop.permute.xlu2 %178 }
  0x66   :  { %v251_v57 = vsub.f32 %v179_v34, %v589_v47 }
  0x68   :  { %v267_v2 = vmul.f32 %v251_v57, %v135_v56 }
  0x6a   :  { %v283_v8 = vsub.f32 100.0, %v267_v2 }
  0x6c   :  { %v299_v20 = vmax.f32 %v283_v8, 0.0 }
  0x6d   :  { %v73_v36 = vpop.permute.xlu2 %72 }
  0x6e   :  { %v137_v5 = vsub.f32 %v73_v36, %v584_v46  ;;  %v316_v30 = vmul.f32 %v299_v20, %v299_v20 }
  0x74   :  { %v169_v35 = vpop.permute.xlu1 %168 }
  0x75   :  { %v53_v37 = vpop.permute.xlu0 %52  ;;  %v194_v40 = vpop.permute.xlu2 %193  ;;  %v249_v53 = vsub.f32 %v169_v35, %v589_v47 }
  0x76   :  { %v133_v54 = vsub.f32 %v53_v37, %v584_v46  ;;  %v254_v14 = vsub.f32 %v194_v40, %v589_v47  ;;  %v362_v40 = vld [vmem:[%s645_s5] sm:$0x1] }
  0x78   :  { %v265_v58 = vmul.f32 %v249_v53, %v133_v54 }
  0x7a   :  { %v281_v3 = vsub.f32 100.0, %v265_v58 }
  0x7c   :  { %v174_v38 = vpop.permute.xlu1 %173  ;;  %v297_v9 = vmax.f32 %v281_v3, 0.0 }
  0x7d   :  { %v58_v39 = vpop.permute.xlu0 %57  ;;  %v88_v43 = vpop.permute.xlu2 %87  ;;  %v250_v49 = vsub.f32 %v174_v38, %v589_v47 }
  0x7e   :  { %v134_v50 = vsub.f32 %v58_v39, %v584_v46  ;;  %v314_v21 = vmul.f32 %v297_v9, %v297_v9  ;;  %v140_v24 = vsub.f32 %v88_v43, %v584_v46  ;;  %v361_v39 = vld [vmem:[%s644_s4] sm:$0x1] }
  0x80   :  { %v266_v55 = vmul.f32 %v250_v49, %v134_v50 }
  0x82   :  { %v282_v61 = vsub.f32 100.0, %v266_v55 }
  0x84   :  { %v184_v41 = vpop.permute.xlu1 %183  ;;  %v298_v6 = vmax.f32 %v282_v61, 0.0 }
  0x85   :  { %v68_v42 = vpop.permute.xlu0 %67  ;;  %v591_v48 = vpop.permute.xlu2 %208  ;;  %v252_v59 = vsub.f32 %v184_v41, %v589_v47 }
  0x86   :  { %v136_v60 = vsub.f32 %v68_v42, %v584_v46  ;;  %v315_v15 = vmul.f32 %v298_v6, %v298_v6  ;;  %v257_v41 = vsub.f32 %v591_v48, %v589_v47 }
  0x88   :  { %v268_v4 = vmul.f32 %v252_v59, %v136_v60  ;;  %v330_v27 = vadd.f32 %v315_v15, %v314_v21 }
  0x8a   :  { %v284_v10 = vsub.f32 100.0, %v268_v4  ;;  %v331_v37 = vadd.f32 %v330_v27, %v316_v30 }
  0x8c   :  { %v78_v44 = vpop.permute.xlu1 %77  ;;  %v300_v22 = vmax.f32 %v284_v10, 0.0 }
  0x8d   :  { %v189_v45 = vpop.permute.xlu0 %188  ;;  %v103_v63 = vpop.permute.xlu2 %102  ;;  %v138_v11 = vsub.f32 %v78_v44, %v584_v46 }
  0x8e   :  { %v253_v0 = vsub.f32 %v189_v45, %v589_v47  ;;  %v317_v31 = vmul.f32 %v300_v22, %v300_v22  ;;  %v363_v45 = vsub.f32 %v361_v39, %v362_v40  ;;  %v143_v56 = vsub.f32 %v103_v63, %v584_v46 }
  0x8f   :  { %v270_v23 = vmul.f32 %v254_v14, %v138_v11 }
  0x90   :  { %v269_v7 = vmul.f32 %v253_v0, %v137_v5  ;;  %v332_v49 = vadd.f32 %v331_v37, %v317_v31  ;;  %v365_v55 = vmul.f32 %v363_v45, %v363_v45 }
  0x91   :  { %v286_v32 = vsub.f32 100.0, %v270_v23 }
  0x92   :  { %v285_v17 = vsub.f32 100.0, %v269_v7  ;;  %v367_v60 = vsel %vm366_vm0, %v365_v55, 0.0 }
  0x93   :  { %v302_v50 = vmax.f32 %v286_v32, 0.0  ;;  %368 = vadd.xlane.f32.xlu0 %v367_v60  ;;  %v448_v60 = vmov 0.0  }
  0x94   :  { %v199_v51 = vpop.permute.xlu1 %198  ;;  %v301_v28 = vmax.f32 %v285_v17, 0.0  ;;  %31 = vst.msk [vmem:[#allocation2] sm:$0x1] %vm30_vm1, %v448_v60 }
  0x95   :  { %v83_v52 = vpop.permute.xlu0 %82  ;;  %v255_v12 = vsub.f32 %v199_v51, %v589_v47  ;;  %v224_v25 = vpop.permute.xlu2 %223  ;;  %v319_v61 = vmul.f32 %v302_v50, %v302_v50  ;;  %32 = vst.msk [vmem:[#allocation3] sm:$0x1] %vm30_vm1, %v448_v60 }
  0x96   :  { %v139_v13 = vsub.f32 %v83_v52, %v584_v46  ;;  %v318_v42 = vmul.f32 %v301_v28, %v301_v28  ;;  %v260_v63 = vsub.f32 %v224_v25, %v589_v47 }
  0x98   :  { %v271_v26 = vmul.f32 %v255_v12, %v139_v13  ;;  %v333_v57 = vadd.f32 %v332_v49, %v318_v42 }
  0x9a   :  { %v287_v33 = vsub.f32 100.0, %v271_v26  ;;  %v334_v4 = vadd.f32 %v333_v57, %v319_v61 }
  0x9c   :  { %v93_v62 = vpop.permute.xlu1 %92  ;;  %v303_v52 = vmax.f32 %v287_v33, 0.0 }
  0x9d   :  { %v204_v1 = vpop.permute.xlu0 %203  ;;  %v141_v34 = vsub.f32 %v93_v62, %v584_v46  ;;  %v118_v58 = vpop.permute.xlu2 %117 }
  0x9e   :  { %v256_v18 = vsub.f32 %v204_v1, %v589_v47  ;;  %v320_v62 = vmul.f32 %v303_v52, %v303_v52  ;;  %v146_v26 = vsub.f32 %v118_v58, %v584_v46 }
  0x9f   :  { %v273_v53 = vmul.f32 %v257_v41, %v141_v34 }
  0xa0   :  { %v272_v29 = vmul.f32 %v256_v18, %v140_v24  ;;  %v335_v10 = vadd.f32 %v334_v4, %v320_v62 }
  0xa1   :  { %v289_v0 = vsub.f32 100.0, %v273_v53 }
  0xa2   :  { %v288_v43 = vsub.f32 100.0, %v272_v29 }
  0xa3   :  { %v305_v11 = vmax.f32 %v289_v0, 0.0 }
  0xa4   :  { %v214_v16 = vpop.permute.xlu1 %213  ;;  %v304_v59 = vmax.f32 %v288_v43, 0.0 }
  0xa5   :  { %v98_v19 = vpop.permute.xlu0 %97  ;;  %v258_v35 = vsub.f32 %v214_v16, %v589_v47  ;;  %v322_v17 = vmul.f32 %v305_v11, %v305_v11  ;;  %v239_v18 = vpop.permute.xlu2 %238 }
  0xa6   :  { %v142_v36 = vsub.f32 %v98_v19, %v584_v46  ;;  %v321_v5 = vmul.f32 %v304_v59, %v304_v59  ;;  %v263_v27 = vsub.f32 %v239_v18, %v589_v47 }
  0xa8   :  { %v274_v54 = vmul.f32 %v258_v35, %v142_v36  ;;  %v336_v15 = vadd.f32 %v335_v10, %v321_v5 }
  0xaa   :  { %v290_v1 = vsub.f32 100.0, %v274_v54  ;;  %v337_v23 = vadd.f32 %v336_v15, %v322_v17 }
  0xac   :  { %v108_v38 = vpop.permute.xlu1 %107  ;;  %v306_v12 = vmax.f32 %v290_v1, 0.0 }
  0xad   :  { %v219_v44 = vpop.permute.xlu0 %218  ;;  %v144_v2 = vsub.f32 %v108_v38, %v584_v46 }
  0xae   :  { %v259_v51 = vsub.f32 %v219_v44, %v589_v47  ;;  %v323_v19 = vmul.f32 %v306_v12, %v306_v12 }
  0xaf   :  { %v276_v13 = vmul.f32 %v260_v63, %v144_v2 }
  0xb0   :  { %v275_v48 = vmul.f32 %v259_v51, %v143_v56  ;;  %v338_v30 = vadd.f32 %v337_v23, %v323_v19 }
  0xb1   :  { %v292_v20 = vsub.f32 100.0, %v276_v13 }
  0xb2   :  { %v291_v8 = vsub.f32 100.0, %v275_v48 }
  0xb3   :  { %v308_v31 = vmax.f32 %v292_v20, 0.0 }
  0xb4   :  { %v229_v3 = vpop.permute.xlu1 %228  ;;  %v307_v16 = vmax.f32 %v291_v8, 0.0  ;;  %v313_v8 = vld [vmem:[#allocation2] sm:$0x1] }
  0xb5   :  { %v261_v6 = vsub.f32 %v229_v3, %v589_v47  ;;  %v113_v7 = vpop.permute.xlu0 %112  ;;  %v325_v37 = vmul.f32 %v308_v31, %v308_v31 }
  0xb6   :  { %v145_v9 = vsub.f32 %v113_v7, %v584_v46  ;;  %v324_v28 = vmul.f32 %v307_v16, %v307_v16 }
  0xb8   :  { %v277_v14 = vmul.f32 %v261_v6, %v145_v9  ;;  %v339_v35 = vadd.f32 %v338_v30, %v324_v28  ;;  %v364_v9 = vld [vmem:[#allocation3] sm:$0x1] }
  0xba   :  { %v293_v21 = vsub.f32 100.0, %v277_v14  ;;  %v340_v44 = vadd.f32 %v339_v35, %v325_v37 }
  0xbc   :  { %v123_v22 = vpop.permute.xlu1 %122  ;;  %v309_v32 = vmax.f32 %v293_v21, 0.0 }
  0xbd   :  { %v147_v24 = vsub.f32 %v123_v22, %v584_v46  ;;  %v234_v25 = vpop.permute.xlu0 %233 }
  0xbe   :  { %v262_v29 = vsub.f32 %v234_v25, %v589_v47  ;;  %v326_v38 = vmul.f32 %v309_v32, %v309_v32 }
  0xbf   :  { %v279_v33 = vmul.f32 %v263_v27, %v147_v24 }
  0xc0   :  { %v278_v34 = vmul.f32 %v262_v29, %v146_v26  ;;  %v341_v50 = vadd.f32 %v340_v44, %v326_v38 }
  0xc1   :  { %v295_v39 = vsub.f32 100.0, %v279_v33 }
  0xc2   :  { %v294_v36 = vsub.f32 100.0, %v278_v34 }
  0xc3   :  { %v311_v51 = vmax.f32 %v295_v39, 0.0 }
  0xc4   :  { %v310_v40 = vmax.f32 %v294_v36, 0.0  ;;  %v244_v41 = vpop.permute.xlu1 %243 }
  0xc5   :  { %v264_v42 = vsub.f32 %v244_v41, %v589_v47  ;;  %v128_v43 = vpop.permute.xlu0 %127  ;;  %v328_v55 = vmul.f32 %v311_v51, %v311_v51 }
  0xc6   :  { %v327_v45 = vmul.f32 %v310_v40, %v310_v40  ;;  %v148_v49 = vsub.f32 %v128_v43, %v584_v46 }
  0xc8   :  { %v280_v52 = vmul.f32 %v264_v42, %v148_v49  ;;  %v342_v54 = vadd.f32 %v341_v50, %v327_v45 }
  0xca   :  { %v296_v53 = vsub.f32 100.0, %v280_v52  ;;  %v343_v58 = vadd.f32 %v342_v54, %v328_v55 }
  0xcc   :  { %v312_v56 = vmax.f32 %v296_v53, 0.0 }
  0xce   :  { %v329_v57 = vmul.f32 %v312_v56, %v312_v56 }
  0xd0   :  { %v344_v59 = vadd.f32 %v343_v58, %v329_v57 }
  0xd2   :  { %345 = vadd.xlane.f32.xlu2 %v344_v59 }
 0x106   :  { %v369_v47 = vpop.xlane.xlu0 %368 }
 0x107   :  { %v370_v48 = vrot.slane %v369_v47, 4 }
 0x109   :  { %v371_v46 = vadd.f32 %v370_v48, %v369_v47 }
 0x10b   :  { %v372_v61 = vrot.slane %v371_v46, 2 }
 0x10d   :  { %v373_v1 = vadd.f32 %v372_v61, %v371_v46 }
 0x10f   :  { %v374_v4 = vrot.slane %v373_v1, 1 }
 0x111   :  { %v375_v7 = vadd.f32 %v374_v4, %v373_v1 }
 0x145   :  { %v346_v62 = vpop.xlane.xlu2 %345 }
 0x146   :  { %v347_v0 = vrot.slane %v346_v62, 4 }
 0x148   :  { %v348_v2 = vadd.f32 %v347_v0, %v346_v62 }
 0x14a   :  { %v349_v3 = vrot.slane %v348_v2, 2 }
 0x14c   :  { %v350_v5 = vadd.f32 %v349_v3, %v348_v2 }
 0x14e   :  { %v351_v6 = vrot.slane %v350_v5, 1 }
 0x150   :  { %v352_v63 = vadd.f32 %v351_v6, %v350_v5 }
 0x152   :  { %409 = vpush %v352_v63 }
 0x153   :  { %411 = vpush %v375_v7 }
 0x183   :  { %s410_s4 = spop %409 }
 0x184   :  { %v354_v10 = vstv %s410_s4  ;;  %s412_s5 = spop %411 }
 0x185   :  { %v355_v11 = vadd.f32 %v354_v10, %v313_v8  ;;  %v377_v12 = vstv %s412_s5 }
 0x186   :  { %v378_v13 = vadd.f32 %v377_v12, %v364_v9 }
 0x187   :  { %357 = vst.msk [vmem:[#allocation2] sm:$0x1] %vm30_vm1, %v355_v11 }
 0x188   :  { %379 = vst.msk [vmem:[#allocation3] sm:$0x1] %vm30_vm1, %v378_v13 }
 0x18e   :  { %v382_v14 = vld [vmem:[#allocation2] sm:$0x1] }
 0x18f   :  { %v407_v15 = vadd.f32 -7840000.0, %v382_v14  ;;  %v385_v17 = vld [vmem:[#allocation3] sm:$0x1] }
 0x190   :  { %v386_v19 = vmul.f32 0.01, %v385_v17 }
 0x191   :  { %v384_v16 = vmul.f32 0.0001, %v407_v15 }
 0x193   :  { %v408_v18 = vadd.f32 -10000.0, %v384_v16 }
 0x195   :  { %v388_v20 = vmul.f32 1e-12, %v408_v18 }
 0x197   :  { %v389_v21 = vadd.f32 %v388_v20, %v386_v19 }
 0x199   :  { %390 = vst.msk [vmem:[#allocation4] sm:$0x1] %vm30_vm1, %v389_v21 }
 0x19a   :  { %401 = dma.vmem_to_hbm [thread:$0]  %s397_s18, 16, %s399_s21, [#allocation5]  }
 0x19b   :  { %445 = dma.done.wait [#allocation5], 16  }
 0x19c   :  { %446 = vsyncadd [#allocation5], 4294967280 }
 0x19d   :  { %406 = vsyncpa [#allocation5], 1 }

</bundles_post_ra>
